<compile_context>
chip_gen: v7x
topology: tpu7x:2x2x1
jax: 0.10.0
libtpu: 0.0.40
codegen_flags: <defaults>
</compile_context>

<pallas_src>
import jax
import jax.numpy as jnp
from jax import lax
from jax.experimental import pallas as pl
from jax.experimental.pallas import tpu as pltpu

LANE = 128  # TPU lane width (last-dim store granularity)


def gmodel_kernel(x_ref, w_e_ref, b_e_ref, w_d_ref, b_d_ref, o_ref):
    # encode: (bm, D_IN) contracted with w_e (H, D_IN) along D_IN  == x @ w_e.T
    h = lax.dot_general(
        x_ref[...], w_e_ref[...],
        dimension_numbers=(((1,), (1,)), ((), ())),
        preferred_element_type=jnp.float32,
    )
    h = h + b_e_ref[...]
    # decode: (bm, H) contracted with w_d_pad (D_OUT_PAD, H) along H == h @ w_d.T
    y = lax.dot_general(
        h, w_d_ref[...],
        dimension_numbers=(((1,), (1,)), ((), ())),
        preferred_element_type=jnp.float32,
    )
    y = y + b_d_ref[...]
    o_ref[...] = y.astype(o_ref.dtype)  # lane-dense (bm, D_OUT_PAD) store


def gmodel_forward(x, w_e, b_e, w_d, b_d, *, bm=None):
    """x: (B, D_IN); w_e: (H, D_IN); b_e: (H,); w_d: (D_OUT, H); b_d: (D_OUT,)."""
    B, D_IN = x.shape
    H = w_e.shape[0]
    D_OUT = w_d.shape[0]

    # --- lane-dense output: pad decode output features up to a LANE multiple.
    D_OUT_PAD = ((D_OUT + LANE - 1) // LANE) * LANE
    pad = D_OUT_PAD - D_OUT
    if pad:
        w_d_p = jnp.pad(w_d, ((0, pad), (0, 0)))
        b_d_p = jnp.pad(b_d, ((0, pad),))
    else:
        w_d_p, b_d_p = w_d, b_d
    b_e2 = b_e.reshape(1, H)
    b_d2 = b_d_p.reshape(1, D_OUT_PAD)

    # --- batch tiling: bm must divide B; multiple of 8 for f32 sublanes.
    if bm is None:
        bm = B
        for cand in (256, 128, 64, 32, 16, 8):
            if B % cand == 0:
                bm = cand
                break
    assert B % bm == 0, "batch tile must divide B"
    grid = (B // bm,)

    flops = 2 * B * D_IN * H + 2 * B * H * D_OUT_PAD
    bytes_accessed = 4 * (
        x.size + w_e.size + b_e2.size + w_d_p.size + b_d2.size + B * D_OUT_PAD
    )

    out = pl.pallas_call(
        gmodel_kernel,
        out_shape=jax.ShapeDtypeStruct((B, D_OUT_PAD), x.dtype),
        grid=grid,
        in_specs=[
            pl.BlockSpec((bm, D_IN), lambda i: (i, 0)),          # x: batch-tiled
            pl.BlockSpec((H, D_IN), lambda i: (0, 0)),           # w_e: resident
            pl.BlockSpec((1, H), lambda i: (0, 0)),              # b_e: resident
            pl.BlockSpec((D_OUT_PAD, H), lambda i: (0, 0)),      # w_d (padded): resident
            pl.BlockSpec((1, D_OUT_PAD), lambda i: (0, 0)),      # b_d (padded): resident
        ],
        out_specs=pl.BlockSpec((bm, D_OUT_PAD), lambda i: (i, 0)),
        compiler_params=pltpu.CompilerParams(
            dimension_semantics=("parallel",),
            vmem_limit_bytes=32 * 1024 * 1024,
        ),
        cost_estimate=pl.CostEstimate(
            flops=flops, transcendentals=0, bytes_accessed=bytes_accessed
        ),
    )(x, w_e, b_e2, w_d_p, b_d2)

    return out[:, :D_OUT] if pad else out


if __name__ == "__main__":
    B, D_IN, H = 64, 64, 32

    key = jax.random.PRNGKey(0)
    kx, k1, k2, k3, k4 = jax.random.split(key, 5)

    x = jax.random.normal(kx, (B, D_IN), dtype=jnp.float32)
    # Deterministic "nn.Linear"-shaped parameters (encode: D_IN->H, decode: H->D_IN).
    w_e = jax.random.normal(k1, (H, D_IN), dtype=jnp.float32) * 0.1
    b_e = jax.random.normal(k2, (H,), dtype=jnp.float32) * 0.1
    w_d = jax.random.normal(k3, (D_IN, H), dtype=jnp.float32) * 0.1
    b_d = jax.random.normal(k4, (D_IN,), dtype=jnp.float32) * 0.1

    # bm=16 exercises a real batch grid (4 steps) with resident weights.
    out = jax.block_until_ready(gmodel_forward(x, w_e, b_e, w_d, b_d, bm=16))

    # Pure-JAX reference of decode(encode(x)).
    ref = (x @ w_e.T + b_e) @ w_d.T + b_d

    assert out.shape == (B, D_IN)
    assert jnp.allclose(out, ref, atol=1e-5, rtol=1e-5)
    print("KERNEL_OK")
</pallas_src>

<mosaic_0001>
module attributes {stable_mosaic.version = 11 : i64} {
  func.func @gmodel_kernel(%arg0: i32, %arg1: memref<16x64xf32, #tpu.memory_space<vmem>>, %arg2: memref<32x64xf32, #tpu.memory_space<vmem>>, %arg3: memref<1x32xf32, #tpu.memory_space<vmem>>, %arg4: memref<128x32xf32, #tpu.memory_space<vmem>>, %arg5: memref<1x128xf32, #tpu.memory_space<vmem>>, %arg6: memref<16x128xf32, #tpu.memory_space<vmem>>) attributes {dimension_semantics = [#tpu.dimension_semantics<parallel>], iteration_bounds = array<i64: 4>, scalar_prefetch = 0 : i64, scratch_operands = 0 : i64, tpu.core_type = #tpu.core_type<tc>, window_params = [{transform_indices = @transform_0, window_bounds = array<i64: 16, 64>}, {pipeline_mode = #tpu.pipeline_mode<synchronous>, transform_indices = @transform_1, window_bounds = array<i64: 32, 64>}, {pipeline_mode = #tpu.pipeline_mode<synchronous>, transform_indices = @transform_2, window_bounds = array<i64: 1, 32>}, {pipeline_mode = #tpu.pipeline_mode<synchronous>, transform_indices = @transform_3, window_bounds = array<i64: 128, 32>}, {pipeline_mode = #tpu.pipeline_mode<synchronous>, transform_indices = @transform_4, window_bounds = array<i64: 1, 128>}, {transform_indices = @transform_5, window_bounds = array<i64: 16, 128>}]} {
    %c0 = arith.constant 0 : index
    %c0_0 = arith.constant 0 : index
    %0 = vector.load %arg1[%c0, %c0_0] : memref<16x64xf32, #tpu.memory_space<vmem>>, vector<16x64xf32>
    %c0_1 = arith.constant 0 : index
    %c0_2 = arith.constant 0 : index
    %1 = vector.load %arg2[%c0_1, %c0_2] : memref<32x64xf32, #tpu.memory_space<vmem>>, vector<32x64xf32>
    %cst = arith.constant dense<0.000000e+00> : vector<16x32xf32>
    %2 = tpu.matmul %0, %1, %cst {dimension_numbers = #tpu.dot_dimension_numbers<[1], [1], [0], [0], [0, 0, 1, 0], [], []>} : vector<16x64xf32>, vector<32x64xf32>, vector<16x32xf32> -> vector<16x32xf32>
    %c0_3 = arith.constant 0 : index
    %c0_4 = arith.constant 0 : index
    %3 = vector.load %arg3[%c0_3, %c0_4] : memref<1x32xf32, #tpu.memory_space<vmem>>, vector<1x32xf32>
    %4 = vector.broadcast %3 : vector<1x32xf32> to vector<16x32xf32>
    %5 = arith.addf %2, %4 : vector<16x32xf32>
    %c0_5 = arith.constant 0 : index
    %c0_6 = arith.constant 0 : index
    %6 = vector.load %arg4[%c0_5, %c0_6] : memref<128x32xf32, #tpu.memory_space<vmem>>, vector<128x32xf32>
    %cst_7 = arith.constant dense<0.000000e+00> : vector<16x128xf32>
    %7 = tpu.matmul %5, %6, %cst_7 {dimension_numbers = #tpu.dot_dimension_numbers<[1], [1], [0], [0], [0, 0, 1, 0], [], []>} : vector<16x32xf32>, vector<128x32xf32>, vector<16x128xf32> -> vector<16x128xf32>
    %c0_8 = arith.constant 0 : index
    %c0_9 = arith.constant 0 : index
    %8 = vector.load %arg5[%c0_8, %c0_9] : memref<1x128xf32, #tpu.memory_space<vmem>>, vector<1x128xf32>
    %9 = vector.broadcast %8 : vector<1x128xf32> to vector<16x128xf32>
    %10 = arith.addf %7, %9 : vector<16x128xf32>
    %c0_10 = arith.constant 0 : index
    %c0_11 = arith.constant 0 : index
    %11 = vector.load %arg6[%c0_10, %c0_11] : memref<16x128xf32, #tpu.memory_space<vmem>>, vector<16x128xf32>
    tpu.vector_store %arg6[%c0_10, %c0_11], %10 {strides = array<i32>} : memref<16x128xf32, #tpu.memory_space<vmem>>, vector<16x128xf32>,
    return
  }
  func.func @transform_0(%arg0: i32) -> (i32, i32) {
    %c0_i32 = arith.constant 0 : i32
    %c0_i32_0 = arith.constant 0 : i32
    return %arg0, %c0_i32 : i32, i32
  }
  func.func @transform_1(%arg0: i32) -> (i32, i32) {
    %c0_i32 = arith.constant 0 : i32
    %c0_i32_0 = arith.constant 0 : i32
    %c0_i32_1 = arith.constant 0 : i32
    return %c0_i32, %c0_i32_0 : i32, i32
  }
  func.func @transform_2(%arg0: i32) -> (i32, i32) {
    %c0_i32 = arith.constant 0 : i32
    %c0_i32_0 = arith.constant 0 : i32
    %c0_i32_1 = arith.constant 0 : i32
    return %c0_i32, %c0_i32_0 : i32, i32
  }
  func.func @transform_3(%arg0: i32) -> (i32, i32) {
    %c0_i32 = arith.constant 0 : i32
    %c0_i32_0 = arith.constant 0 : i32
    %c0_i32_1 = arith.constant 0 : i32
    return %c0_i32, %c0_i32_0 : i32, i32
  }
  func.func @transform_4(%arg0: i32) -> (i32, i32) {
    %c0_i32 = arith.constant 0 : i32
    %c0_i32_0 = arith.constant 0 : i32
    %c0_i32_1 = arith.constant 0 : i32
    return %c0_i32, %c0_i32_0 : i32, i32
  }
  func.func @transform_5(%arg0: i32) -> (i32, i32) {
    %c0_i32 = arith.constant 0 : i32
    %c0_i32_0 = arith.constant 0 : i32
    return %arg0, %c0_i32 : i32, i32
  }
}

</mosaic_0001>

<bundles_post_ra>
// kernel: tpu_custom_call.1
= control target key start
LH: loop header
LB: loop body
LE: loop exit
PB: predicated region body
PF: predicated region fallthrough
CT: control target
= control target key end

     0   :  { %10 = vsyncpa [#allocation3], 0  ;;  %s1095_s0 = inlined_call_operand.vmem [shape: f32[64,64], index: 0, kind: input, shape index: {}]   ;;  %s1096_s1 = inlined_call_operand.vmem [shape: f32[32,64], index: 1, kind: input, shape index: {}]   ;;  %s1097_s2 = inlined_call_operand.vmem [shape: f32[1,32], index: 2, kind: input, shape index: {}]   ;;  %s1098_s3 = inlined_call_operand.vmem [shape: f32[128,32], index: 3, kind: input, shape index: {}]   ;;  %s1099_s4 = inlined_call_operand.vmem [shape: f32[1,128], index: 4, kind: input, shape index: {}]   ;;  %s1100_s5 = inlined_call_operand.hbm [shape: f32[64,128], index: 5, kind: output, shape index: {}]  }
   0x1   :  { %12 = vsyncpa [#allocation3 + $0x1], 0  ;;  %s871_s18 = smov 0   ;;  %s873_s19 = smov 0  }
   0x2   :  { %s875_s20 = smov 0   ;;  %s877_s21 = smov 0  }
   0x3 LB: > { %s892_s22 = sadd.s32 4294967295, %s836_s21   ;;  %s564_s23 = sadd.s32 4294967294, %s836_s21   ;;  %s836_s21 = sphi %s877_s21, %s1110_s21   ;;  %s832_s20 = sphi %s875_s20, %s1109_s20   ;;  %s828_s19 = sphi %s873_s19, %s1108_s19   ;;  %s824_s18 = sphi %s871_s18, %s1107_s18  }
   0x4   : > { %s896_s24 = sadd.s32 1, %s836_s21   ;;  %s135_s25 = sadd.s32 1, %s832_s20 }
   0x5   : > { %s132_s26 = ssub.s32 %s836_s21, %s896_s24  ;;  %p145_p0 = scmp.ne.s32.totalorder %s832_s20, %s828_s19 }
   0x6   : > { %p133_p1 = scmp.eq.s32.totalorder %s132_s26, 0  ;;  %p146_p2 = scmp.eq.s32.totalorder %s892_s22, 3 }
   0x7   : > { %p151_p3 = scmp.ne.s32.totalorder %s828_s19, %s824_s18  ;;  %p152_p4 = scmp.eq.s32.totalorder %s564_s23, 3 }
   0x8   : > { %s907_s27 = scalar_select %p133_p1, %s832_s20, %s135_s25  }
   0x9   : > { %p909_p5 = por %p146_p2, %p145_p0  ;;  %p913_p6 = por %p152_p4, %p151_p3 }
   0xa   : > { %p567_p7 = scmp.ge.s32.totalorder %s836_s21, 1  ;;  %p191_p8 = scmp.lt.s32.totalorder %s836_s21, 5 }
   0xc   : > { %p192_p9 = pnand %p567_p7, %p191_p8 }
   0xd   : > { %v228_v0 = vld [vmem:[%s1096_s1] sm:$0xff] (!%p192_p9)  ;;  %v229_v1 = vld [vmem:[%s1096_s1 + $0x8] sm:$0xff] (!%p192_p9)  ;;  %vm239_vm0 = vcmask (!%p192_p9), 523264   ;;  %v230_v2 = vld [vmem:[%s1096_s1 + $0x10] sm:$0xff] (!%p192_p9)  ;;  %s569_s11 = sshll.u32 (!%p192_p9), %s892_s22, 1  ;;  %vm356_vm1 = vcmask (!%p192_p9), 261120  }
   0xe   : > { %195 = sbr.rel (%p192_p9) target bundleno = 478 (0x1de), region = 40  ;;  %v673_v3 = vpack.c.bf16 (!%p192_p9), %v229_v1, %v228_v0  ;;  %vm931_vm2 = vmpackc.low (!%p192_p9), %vm239_vm0, %vm239_vm0  ;;  %v231_v5 = vld [vmem:[%s1096_s1 + $0x18] sm:$0xff] (!%p192_p9)  ;;  %p220_p10 = scmp.lt.s32.totalorder (!%p192_p9), %s569_s11, 7  ;;  %v333_v6 = vld [vmem:[%s1098_s3] sm:$0xff] (!%p192_p9) }
   0xf   : > { %v679_v7 = vpack.c.bf16 (!%p192_p9), %v231_v5, %v230_v2  ;;  %v334_v8 = vld [vmem:[%s1098_s3 + $0x8] sm:$0xff] (!%p192_p9)  ;;  %vm946_vm3 = vmpackc.low (!%p192_p9), %vm356_vm1, %vm356_vm1  ;;  %v335_v10 = vld [vmem:[%s1098_s3 + $0x10] sm:$0xff] (!%p192_p9)  ;;  %s216_s26 = sand.u32 (!%p192_p9), 1, %s828_s19   ;;  %s602_s10 = sshll.u32 (!%p192_p9), %s892_s22, 8 }
  0x10   : > { %675 = vmatprep.subr.msk.bf16.mxu0 (!%p192_p9), %vm931_vm2, %v673_v3  ;;  %v685_v11 = vpack.c.bf16 (!%p192_p9), %v334_v8, %v333_v6  ;;  %v336_v12 = vld [vmem:[%s1098_s3 + $0x18] sm:$0xff] (!%p192_p9)  ;;  %v337_v15 = vld [vmem:[%s1098_s3 + $0x20] sm:$0xff] (!%p192_p9)  ;;  %v338_v16 = vld [vmem:[%s1098_s3 + $0x28] sm:$0xff] (!%p192_p9)  ;;  %s568_s30 = sshll.u32 (!%p192_p9), %s216_s26, 4  ;;  %s1052_s13 = scalar_lea.hbm (!%p192_p9), %s1100_s5, %s602_s10 }
  0x11   : > { %678 = vmatpush3.bf16.xpose.msk.msra.mxu0 (!%p192_p9), %vm931_vm2, %v673_v3  ;;  %v691_v13 = vpack.c.bf16 (!%p192_p9), %v336_v12, %v335_v10  ;;  %v697_v17 = vpack.c.bf16 (!%p192_p9), %v338_v16, %v337_v15  ;;  %v339_v19 = vld [vmem:[%s1098_s3 + $0x30] sm:$0xff] (!%p192_p9)  ;;  %v340_v20 = vld [vmem:[%s1098_s3 + $0x38] sm:$0xff] (!%p192_p9)  ;;  %v341_v22 = vld [vmem:[%s1098_s3 + $0x40] sm:$0xff] (!%p192_p9)  ;;  %s218_s8 = scalar_lea.vmem (!%p192_p9), [#allocation2], %s568_s30  ;;  %s1054_s14 = scalar_lea.sflag (!%p192_p9), [#allocation3], %s216_s26 }
  0x12   : > { %681 = vmatprep.subr.msk.bf16.mxu0 (!%p192_p9), %vm931_vm2, %v679_v7  ;;  %687 = vmatprep.subr.msk.bf16.mxu1 (!%p192_p9), %vm946_vm3, %v685_v11  ;;  %v703_v21 = vpack.c.bf16 (!%p192_p9), %v340_v20, %v339_v19  ;;  %v342_v23 = vld [vmem:[%s1098_s3 + $0x48] sm:$0xff] (!%p192_p9)  ;;  %v343_v25 = vld [vmem:[%s1098_s3 + $0x50] sm:$0xff] (!%p192_p9)  ;;  %v344_v26 = vld [vmem:[%s1098_s3 + $0x58] sm:$0xff] (!%p192_p9)  ;;  %s838_s22 = smov (!%p192_p9), [#allocation2]  }
  0x13   : > { %690 = vmatpush3.bf16.xpose.msk.msra.mxu1 (!%p192_p9), %vm946_vm3, %v685_v11  ;;  %v709_v24 = vpack.c.bf16 (!%p192_p9), %v342_v23, %v341_v22  ;;  %v715_v27 = vpack.c.bf16 (!%p192_p9), %v344_v26, %v343_v25  ;;  %v345_v28 = vld [vmem:[%s1098_s3 + $0x60] sm:$0xff] (!%p192_p9)  ;;  %v346_v29 = vld [vmem:[%s1098_s3 + $0x68] sm:$0xff] (!%p192_p9)  ;;  %v347_v31 = vld [vmem:[%s1098_s3 + $0x70] sm:$0xff] (!%p192_p9)  ;;  %s778_s16 = sshll.u32 (!%p192_p9), %s838_s22, 4  ;;  %s779_s16 = int_to_ptr.vmem [resolvable:$false] %s778_s16 }
  0x14   : > { %693 = vmatprep.subr.msk.bf16.mxu1 (!%p192_p9), %vm946_vm3, %v691_v13  ;;  %v721_v30 = vpack.c.bf16 (!%p192_p9), %v346_v29, %v345_v28  ;;  %v348_v32 = vld [vmem:[%s1098_s3 + $0x78] sm:$0xff] (!%p192_p9)  ;;  %v571_v34 = vld [vmem:[%s1097_s2] ss:$0 sm:$0xff] (!%p192_p9)  ;;  %s780_s17 = scalar_lea.vmem (!%p192_p9), %s779_s16, 512 }
  0x15   : > { %s1112_s11 = smov (!%p220_p10, %s569_s11), 7  ;;  %v727_v33 = vpack.c.bf16 %v348_v32, %v347_v31  ;;  %v578_v39 = vld [vmem:[%s1099_s4] ss:$0 sm:$0xff] }
  0x16   : > { %s570_s6 = sshll.u32 %s1112_s11, 3 }
  0x17   : > { %s223_s9 = scalar_lea.vmem %s1095_s0, %s570_s6 }
  0x18   : > { %v226_v14 = vld [vmem:[%s223_s9] sm:$0xff]  ;;  %v227_v18 = vld [vmem:[%s223_s9 + $0x8] sm:$0xff]  ;;  %s502_s9 = sshll.u32 %s218_s8, 4  ;;  %s1047_s9 = int_to_ptr.vmem [resolvable:$true] %s502_s9 }
  0x19   : > { %635 = vmatprep.mubr.msk.f32.mxu0 %vm239_vm0, %v226_v14  ;;  %684 = vmatpush3.bf16.xpose.msk.msra.mxu0 %vm931_vm2, %v679_v7  ;;  %s774_s15 = scalar_lea.vmem %s1047_s9, 256  ;;  %p781_p0 = scmp.lt.s32.totalorder %s1047_s9, %s779_s16 }
  0x1a   : > { %p775_p11 = scmp.ne.s32.totalorder %s1047_s9, %s774_s15  ;;  %p782_p1 = scmp.lt.s32.totalorder %s780_s17, %s774_s15 }
  0x1b   : > { %696 = vmatpush3.bf16.xpose.msk.msra.mxu1 %vm946_vm3, %v691_v13 }
  0x1c   : > { %699 = vmatprep.subr.msk.bf16.mxu1 %vm946_vm3, %v697_v17  ;;  %p776_p12 = pnand %p775_p11, %p909_p5  ;;  %p783_p2 = por %p782_p1, %p781_p0 }
  0x1e   : > { %p777_p13 = pneg %p776_p12 }
  0x20   : > { %636 = vmatmul.mubr.msk.f32.vlgmr.msra.gmra.mrb[0].mxu0 %vm239_vm0, %v227_v18  ;;  %p784_p3 = pnand %p783_p2, %p777_p13 }
  0x23   : > { %702 = vmatpush3.bf16.xpose.msk.msra.mxu1 %vm946_vm3, %v697_v17 }
  0x24   : > { %705 = vmatprep.subr.msk.bf16.mxu1 %vm946_vm3, %v703_v21 }
  0x2b   : > { %708 = vmatpush3.bf16.xpose.msk.msra.mxu1 %vm946_vm3, %v703_v21 }
  0x2c   : > { %711 = vmatprep.subr.msk.bf16.mxu1 %vm946_vm3, %v709_v24 }
  0x33   : > { %714 = vmatpush3.bf16.xpose.msk.msra.mxu1 %vm946_vm3, %v709_v24 }
  0x34   : > { %717 = vmatprep.subr.msk.bf16.mxu1 %vm946_vm3, %v715_v27 }
  0x3b   : > { %720 = vmatpush3.bf16.xpose.msk.msra.mxu1 %vm946_vm3, %v715_v27 }
  0x3c   : > { %723 = vmatprep.subr.msk.bf16.mxu1 %vm946_vm3, %v721_v30 }
  0x43   : > { %726 = vmatpush3.bf16.xpose.msk.msra.mxu1 %vm946_vm3, %v721_v30 }
  0x44   : > { %729 = vmatprep.subr.msk.bf16.mxu1 %vm946_vm3, %v727_v33 }
  0x4b   : > { %732 = vmatpush3.bf16.xpose.msk.msra.mxu1 %vm946_vm3, %v727_v33 }
  0xf3   : > { %v637_v35 = vpop.f32.mrb[0].mxu0 }
  0xf4   : > { %v324_v36 = vpop.f32.mrb[1].mxu0  ;;  %v330_v38 = vadd.f32 %v637_v35, %v571_v34 }
  0xf5   : > { %v325_v37 = vadd.f32 %v571_v34, %v324_v36 }
  0xf7   : > { %670 = vmatprep.mubr.msk.f32.mxu1 %vm356_vm1, %v325_v37 }
  0xf8   : > { %671 = vmatmul.mubr.msk.f32.vlgmr.msra.gmra.mrb[0].mxu1 %vm356_vm1, %v330_v38 }
 0x1cb   : > { %v672_v40 = vpop.f32.mrb[0].mxu1 }
 0x1cc   : > { %v483_v41 = vadd.f32 %v672_v40, %v578_v39  ;;  %v477_v42 = vpop.f32.mrb[1].mxu1 }
 0x1cd   : > { %v478_v43 = vadd.f32 %v578_v39, %v477_v42 }
 0x1ce   : > { %487 = vst [vmem:[%s218_s8 + $0x8] sm:$0xff] %v483_v41 }
 0x1cf   : > { %486 = vst [vmem:[%s218_s8] sm:$0xff] %v478_v43 }
 0x1d0   : > { %787 = shalt.err (!%p784_p3)
}
 0x1d1   : > { %s788_s23 = scalar_lea.hbm %s1052_s13, 256  ;;  %s792_s30 = scalar_lea.hbm %s1100_s5, 1024 }
 0x1d2   : > { %p789_p4 = scmp.ne.s32.totalorder %s1052_s13, %s788_s23  ;;  %p793_p9 = scmp.lt.u32.totalorder %s1052_s13, %s1100_s5 }
 0x1d3   : > { %p794_p10 = scmp.lt.u32.totalorder %s792_s30, %s788_s23  ;;  %p796_p12 = scmp.lt.u32.totalorder %s788_s23, %s1052_s13 }
 0x1d4   : > { %p790_p7 = pnand %p789_p4, %p909_p5 }
 0x1d5   : > { %p795_p11 = por %p794_p10, %p793_p9 }
 0x1d6   : > { %p791_p8 = pneg %p790_p7 }
 0x1d7   : > { %p797_p13 = por %p796_p12, %p795_p11 }
 0x1d9   : > { %p798_p0 = pnand %p797_p13, %p791_p8 }
 0x1db   : > { %801 = shalt.err (!%p798_p0)
}
 0x1dc   : > { %s839_s8 = smov 128   ;;  %s840_s10 = smov 8  }
 0x1dd   : > { %733 = dma.vmem_to_hbm [thread:$0]  (%p909_p5), %s1047_s9, 256, %s1052_s13, %s1054_s14, %s839_s8, %s839_s8, %s840_s10  }
 0x1de PF: > { %p739_p1 = scmp.ge.s32.totalorder %s836_s21, 2  ;;  %s517_s12 = sand.u32 1, %s824_s18  }
 0x1df   : > { %s518_s11 = scalar_lea.sflag [#allocation3], %s517_s12 }
 0x1e0   : > { %p736_p2 = pnand %p739_p1, %p913_p6 }
 0x1e2   : > { %819 = dma.done.wait (!%p736_p2), %s518_s11, 256  }
 0x1e3   : > { %821 = vsyncadd (!%p736_p2), %s518_s11, 4294967040  ;;  %p15_p3 = scmp.ge.s32.totalorder %s896_s24, 6   ;;  %s1107_s18 = smov %s828_s19 }
 0x1e4   : > { %s1108_s19 = smov %s832_s20  ;;  %s1109_s20 = smov %s907_s27 }
 0x1e5   : > { %s1110_s21 = smov %s896_s24  ;;  %17 = sbr.rel (!%p15_p3) target bundleno = 3 (0x3), region = 75 }
 0x1ec   :  { %523 = vsyncpa [#allocation3], 1 }
 0x1ed   :  { %525 = vsyncpa [#allocation3 + $0x1], 1 }

</bundles_post_ra>
